<compile_context>
chip_gen: v7x
topology: tpu7x:2x2x1
jax: 0.10.0
libtpu: 0.0.40
codegen_flags: <defaults>
</compile_context>

<pallas_src>
import functools

import jax
import jax.numpy as jnp
from jax.experimental import pallas as pl
from jax.experimental.pallas import tpu as pltpu


def _round_up(x, m):
    return ((x + m - 1) // m) * m


# ----------------------------- Pallas kernel --------------------------------
def _deepcrossing_kernel(n_res_layers, x_ref, w_ref, out_ref):
    """One batch tile of the DeepCrossing MLP hot path (transposed layout).

    x_ref   : (P, TB)       bf16  feature-major activations; row `dim_stack`
                                  is the constant-1 bias lane, higher rows 0.
    w_ref   : (2L+1, P, P)  bf16  transposed, bias-augmented weights:
                                  [W1_0^T, W2_0^T, ..., W1_{L-1}^T, W2_{L-1}^T, Wf^T]
    out_ref : (1, TB)       f32   sigmoid(logit) per batch column.
    """
    r = x_ref[...].astype(jnp.float32)                     # (P, TB) residual, f32
    for l in range(n_res_layers):
        h = jnp.dot(w_ref[2 * l], r.astype(jnp.bfloat16),
                    preferred_element_type=jnp.float32)    # W1^T @ r  (+ b1 via bias lane)
        y = jnp.dot(w_ref[2 * l + 1], h.astype(jnp.bfloat16),
                    preferred_element_type=jnp.float32)    # W2^T @ h  (+ b2 via bias lane)
        r = jnp.maximum(y + r, 0.0)                        # ReLU(linear2(linear1(x)) + x)

    # res_dropout: p = 0.0 (inference) -> identity, nothing to compute.

    logits = jnp.dot(w_ref[2 * n_res_layers], r.astype(jnp.bfloat16),
                     preferred_element_type=jnp.float32)   # (P, TB); only row 0 is real
    out_ref[...] = jax.nn.sigmoid(logits[0:1, :])          # compact, lane-dense store


# --------------------------- parameter packing -------------------------------
def _pack_weights(params, p):
    """Pack transposed, bias-augmented weights into one (2L+1, P, P) bf16 slab.

    Row `dim_stack` of the activation slab is the constant 1; the matching row
    of each augmented weight carries the bias, so the kernel needs no bias adds.
    """
    d = params["linear_w"].shape[0]            # dim_stack; row d = bias lane
    ws = []
    for (w1, b1, w2, b2) in params["res_blocks"]:
        h = w1.shape[1]
        w1a = (jnp.zeros((p, p), jnp.float32)
               .at[:d, :h].set(w1)
               .at[d, :h].set(b1.reshape(-1))
               .at[d, h].set(1.0))             # propagate the 1 into h's bias lane
        w2a = (jnp.zeros((p, p), jnp.float32)
               .at[:h, :d].set(w2)
               .at[h, :d].set(b2.reshape(-1)))  # column d stays 0 -> residual keeps bias lane = 1
        ws += [w1a.T, w2a.T]
    o = params["linear_w"].shape[1]
    wfa = (jnp.zeros((p, p), jnp.float32)
           .at[:d, :o].set(params["linear_w"])
           .at[d, :o].set(params["linear_b"].reshape(-1)))
    ws.append(wfa.T)
    return jnp.stack(ws).astype(jnp.bfloat16)  # (2L+1, P, P)


# ------------------------------ forward pass ---------------------------------
def deepcrossing_forward(x, params, *, tile_b=1024):
    """x: (B, 13 + num_sparse) float32; params: dict of model parameters."""
    dense_inputs = x[:, :13]                        # (B, 13)
    sparse_inputs = x[:, 13:].astype(jnp.int32)     # (B, num_sparse)

    # Embedding lookup (XLA glue; see TODO at top of file).
    sparse_embeds = [
        jnp.take(params["embeddings"][i], sparse_inputs[:, i], axis=0)
        for i in range(sparse_inputs.shape[1])
    ]

    B = x.shape[0]
    hidden = [w1.shape[1] for (w1, _, _, _) in params["res_blocks"]]
    dim_stack = params["linear_w"].shape[0]
    out_dim = params["linear_w"].shape[1]
    n_layers = len(params["res_blocks"])
    n_slabs = 2 * n_layers + 1

    # Lane-aligned feature width; +1 leaves room for the constant-1 bias lane.
    P = 128 * pl.cdiv(max([dim_stack, out_dim] + hidden) + 1, 128)

    # Batch tiling: TB is the lane axis of every block -> multiple of 128.
    n_min = _round_up(B, 128)
    TB = min(max(128, _round_up(tile_b, 128)), n_min)
    if n_min // TB < 2 and n_min >= 2 * 128:
        TB = max(128, ((n_min // 2) // 128) * 128)   # >= 2 tiles: feed both v7x TCs
    B_pad = _round_up(B, TB)

    # One concatenate (features + bias lane of ones) + one pad builds the
    # transposed bf16 activation slab; no zeros().at[].set() HBM round trip.
    stack_aug = jnp.concatenate(
        sparse_embeds + [dense_inputs, jnp.ones((B, 1), jnp.float32)], axis=-1)
    da = stack_aug.shape[1]                          # dim_stack + 1
    x_slab = jnp.pad(stack_aug.T.astype(jnp.bfloat16),
                     ((0, P - da), (0, B_pad - B)))  # (P, B_pad) bf16

    w_slab = _pack_weights(params, P)                # (2L+1, P, P) bf16

    flops = 2 * n_slabs * P * P * B_pad
    bytes_accessed = x_slab.size * 2 + w_slab.size * 2 + B_pad * 4

    kernel = functools.partial(_deepcrossing_kernel, n_layers)
    out = pl.pallas_call(
        kernel,
        out_shape=jax.ShapeDtypeStruct((1, B_pad), jnp.float32),
        grid=(B_pad // TB,),
        in_specs=[
            pl.BlockSpec((P, TB), lambda i: (0, i)),             # activations (streamed)
            pl.BlockSpec((n_slabs, P, P), lambda i: (0, 0, 0)),  # weights (VMEM-resident)
        ],
        out_specs=pl.BlockSpec((1, TB), lambda i: (0, i)),       # compact lane-dense output
        compiler_params=pltpu.CompilerParams(
            dimension_semantics=("parallel",),        # batch tiles across TensorCores
            vmem_limit_bytes=32 * 1024 * 1024),       # safe on v5e/v6e/v7x
        cost_estimate=pl.CostEstimate(
            flops=flops, transcendentals=B_pad, bytes_accessed=bytes_accessed),
    )(x_slab, w_slab)

    return out[0, :B]                               # outputs.view(B)


# --------------------------- pure-JAX reference -------------------------------
def deepcrossing_reference(x, params):
    dense_inputs = x[:, :13]
    sparse_inputs = x[:, 13:].astype(jnp.int32)
    sparse_embeds = [jnp.take(params["embeddings"][i], sparse_inputs[:, i], axis=0)
                     for i in range(sparse_inputs.shape[1])]
    r = jnp.concatenate(sparse_embeds + [dense_inputs], axis=-1)
    for (w1, b1, w2, b2) in params["res_blocks"]:
        h = r @ w1 + b1
        y = h @ w2 + b2
        r = jnp.maximum(y + r, 0.0)
    logits = r @ params["linear_w"] + params["linear_b"]
    return jax.nn.sigmoid(logits)[:, 0]


# --------------------------- parameter construction --------------------------
def init_params(key, num_sparse, feat_num, embed_dim, n_dense, hidden_units,
                output_dim=1):
    dim_stack = n_dense + num_sparse * embed_dim
    keys = jax.random.split(key, num_sparse + 3 * len(hidden_units) + 2)
    k = iter(keys)

    embeddings = [
        0.1 * jax.random.normal(next(k), (feat_num, embed_dim), jnp.float32)
        for _ in range(num_sparse)
    ]

    res_blocks = []
    for h in hidden_units:
        w1 = 0.1 * jax.random.normal(next(k), (dim_stack, h), jnp.float32)
        b1 = 0.01 * jax.random.normal(next(k), (1, h), jnp.float32)
        w2 = 0.1 * jax.random.normal(next(k), (h, dim_stack), jnp.float32)
        b2 = jnp.zeros((1, dim_stack), jnp.float32)
        res_blocks.append((w1, b1, w2, b2))

    linear_w = 0.1 * jax.random.normal(next(k), (dim_stack, output_dim), jnp.float32)
    linear_b = jnp.zeros((1, output_dim), jnp.float32)

    return {
        "embeddings": embeddings,
        "res_blocks": res_blocks,
        "linear_w": linear_w,
        "linear_b": linear_b,
    }


# --------------------------------- main --------------------------------------
if __name__ == "__main__":
    B = 8
    N_DENSE = 13
    NUM_SPARSE = 5
    FEAT_NUM = 50
    EMBED_DIM = 10
    HIDDEN_UNITS = [64, 32]

    root = jax.random.PRNGKey(0)
    k_params, k_dense, k_sparse = jax.random.split(root, 3)

    params = init_params(k_params, NUM_SPARSE, FEAT_NUM, EMBED_DIM,
                         N_DENSE, HIDDEN_UNITS)

    dense_part = jax.random.normal(k_dense, (B, N_DENSE), jnp.float32)
    sparse_part = jax.random.randint(
        k_sparse, (B, NUM_SPARSE), 0, FEAT_NUM).astype(jnp.float32)
    x = jnp.concatenate([dense_part, sparse_part], axis=-1)   # (B, 18) float32

    fwd = jax.jit(deepcrossing_forward)
    out = jax.block_until_ready(fwd(x, params))
    ref = deepcrossing_reference(x, params)

    assert out.shape == (B,)
    assert bool(jnp.all(jnp.isfinite(out)))
    assert bool(jnp.all((out >= 0.0) & (out <= 1.0)))
    max_err = float(jnp.max(jnp.abs(out - ref)))
    assert max_err < 3e-2, f"mismatch vs reference: {max_err}"
    print("KERNEL_OK")
</pallas_src>

<mosaic_0001>
module attributes {stable_mosaic.version = 11 : i64} {
  func.func @_deepcrossing_kernel(%arg0: i32, %arg1: memref<128x128xbf16, #tpu.memory_space<vmem>>, %arg2: memref<5x128x128xbf16, #tpu.memory_space<vmem>>, %arg3: memref<1x128xf32, #tpu.memory_space<vmem>>) attributes {dimension_semantics = [#tpu.dimension_semantics<parallel>], iteration_bounds = array<i64: 1>, scalar_prefetch = 0 : i64, scratch_operands = 0 : i64, tpu.core_type = #tpu.core_type<tc>, window_params = [{transform_indices = @transform_0, window_bounds = array<i64: 128, 128>}, {pipeline_mode = #tpu.pipeline_mode<synchronous>, transform_indices = @transform_1, window_bounds = array<i64: 5, 128, 128>}, {transform_indices = @transform_2, window_bounds = array<i64: 1, 128>}]} {
    %c0 = arith.constant 0 : index
    %c0_0 = arith.constant 0 : index
    %0 = vector.load %arg1[%c0, %c0_0] : memref<128x128xbf16, #tpu.memory_space<vmem>>, vector<128x128xbf16>
    %1 = arith.extf %0 : vector<128x128xbf16> to vector<128x128xf32>
    %c0_1 = arith.constant 0 : index
    %c0_2 = arith.constant 0 : index
    %c0_3 = arith.constant 0 : index
    %2 = vector.load %arg2[%c0_1, %c0_2, %c0_3] : memref<5x128x128xbf16, #tpu.memory_space<vmem>>, vector<1x128x128xbf16>
    %3 = vector.shape_cast %2 : vector<1x128x128xbf16> to vector<128x128xbf16>
    %4 = arith.truncf %1 : vector<128x128xf32> to vector<128x128xbf16>
    %cst = arith.constant dense<0.000000e+00> : vector<128x128xf32>
    %5 = tpu.matmul %3, %4, %cst {dimension_numbers = #tpu.dot_dimension_numbers<[1], [0], [0], [1], [0, 0, 1, 1], [], []>} : vector<128x128xbf16>, vector<128x128xbf16>, vector<128x128xf32> -> vector<128x128xf32>
    %c1 = arith.constant 1 : index
    %c0_4 = arith.constant 0 : index
    %c0_5 = arith.constant 0 : index
    %6 = vector.load %arg2[%c1, %c0_4, %c0_5] : memref<5x128x128xbf16, #tpu.memory_space<vmem>>, vector<1x128x128xbf16>
    %7 = vector.shape_cast %6 : vector<1x128x128xbf16> to vector<128x128xbf16>
    %8 = arith.truncf %5 : vector<128x128xf32> to vector<128x128xbf16>
    %cst_6 = arith.constant dense<0.000000e+00> : vector<128x128xf32>
    %9 = tpu.matmul %7, %8, %cst_6 {dimension_numbers = #tpu.dot_dimension_numbers<[1], [0], [0], [1], [0, 0, 1, 1], [], []>} : vector<128x128xbf16>, vector<128x128xbf16>, vector<128x128xf32> -> vector<128x128xf32>
    %10 = arith.addf %9, %1 : vector<128x128xf32>
    %cst_7 = arith.constant 0.000000e+00 : f32
    %11 = vector.broadcast %cst_7 : f32 to vector<128x128xf32>
    %12 = arith.maximumf %10, %11 : vector<128x128xf32>
    %c2 = arith.constant 2 : index
    %c0_8 = arith.constant 0 : index
    %c0_9 = arith.constant 0 : index
    %13 = vector.load %arg2[%c2, %c0_8, %c0_9] : memref<5x128x128xbf16, #tpu.memory_space<vmem>>, vector<1x128x128xbf16>
    %14 = vector.shape_cast %13 : vector<1x128x128xbf16> to vector<128x128xbf16>
    %15 = arith.truncf %12 : vector<128x128xf32> to vector<128x128xbf16>
    %cst_10 = arith.constant dense<0.000000e+00> : vector<128x128xf32>
    %16 = tpu.matmul %14, %15, %cst_10 {dimension_numbers = #tpu.dot_dimension_numbers<[1], [0], [0], [1], [0, 0, 1, 1], [], []>} : vector<128x128xbf16>, vector<128x128xbf16>, vector<128x128xf32> -> vector<128x128xf32>
    %c3 = arith.constant 3 : index
    %c0_11 = arith.constant 0 : index
    %c0_12 = arith.constant 0 : index
    %17 = vector.load %arg2[%c3, %c0_11, %c0_12] : memref<5x128x128xbf16, #tpu.memory_space<vmem>>, vector<1x128x128xbf16>
    %18 = vector.shape_cast %17 : vector<1x128x128xbf16> to vector<128x128xbf16>
    %19 = arith.truncf %16 : vector<128x128xf32> to vector<128x128xbf16>
    %cst_13 = arith.constant dense<0.000000e+00> : vector<128x128xf32>
    %20 = tpu.matmul %18, %19, %cst_13 {dimension_numbers = #tpu.dot_dimension_numbers<[1], [0], [0], [1], [0, 0, 1, 1], [], []>} : vector<128x128xbf16>, vector<128x128xbf16>, vector<128x128xf32> -> vector<128x128xf32>
    %21 = arith.addf %20, %12 : vector<128x128xf32>
    %cst_14 = arith.constant 0.000000e+00 : f32
    %22 = vector.broadcast %cst_14 : f32 to vector<128x128xf32>
    %23 = arith.maximumf %21, %22 : vector<128x128xf32>
    %c4 = arith.constant 4 : index
    %c0_15 = arith.constant 0 : index
    %c0_16 = arith.constant 0 : index
    %24 = vector.load %arg2[%c4, %c0_15, %c0_16] : memref<5x128x128xbf16, #tpu.memory_space<vmem>>, vector<1x128x128xbf16>
    %25 = vector.shape_cast %24 : vector<1x128x128xbf16> to vector<128x128xbf16>
    %26 = arith.truncf %23 : vector<128x128xf32> to vector<128x128xbf16>
    %cst_17 = arith.constant dense<0.000000e+00> : vector<128x128xf32>
    %27 = tpu.matmul %25, %26, %cst_17 {dimension_numbers = #tpu.dot_dimension_numbers<[1], [0], [0], [1], [0, 0, 1, 1], [], []>} : vector<128x128xbf16>, vector<128x128xbf16>, vector<128x128xf32> -> vector<128x128xf32>
    %28 = vector.extract_strided_slice %27 {offsets = [0, 0], sizes = [1, 128], strides = [1, 1]} : vector<128x128xf32> to vector<1x128xf32>
    %29 = arith.negf %28 : vector<1x128xf32>
    %30 = math.exp %29 : vector<1x128xf32>
    %cst_18 = arith.constant 1.000000e+00 : f32
    %31 = vector.broadcast %cst_18 : f32 to vector<1x128xf32>
    %32 = arith.addf %31, %30 : vector<1x128xf32>
    %33 = arith.divf %31, %32 : vector<1x128xf32>
    %c0_19 = arith.constant 0 : index
    %c0_20 = arith.constant 0 : index
    %34 = vector.load %arg3[%c0_19, %c0_20] : memref<1x128xf32, #tpu.memory_space<vmem>>, vector<1x128xf32>
    tpu.vector_store %arg3[%c0_19, %c0_20], %33 {strides = array<i32>} : memref<1x128xf32, #tpu.memory_space<vmem>>, vector<1x128xf32>,
    return
  }
  func.func @transform_0(%arg0: i32) -> (i32, i32) {
    %c0_i32 = arith.constant 0 : i32
    %c0_i32_0 = arith.constant 0 : i32
    return %c0_i32, %arg0 : i32, i32
  }
  func.func @transform_1(%arg0: i32) -> (i32, i32, i32) {
    %c0_i32 = arith.constant 0 : i32
    %c0_i32_0 = arith.constant 0 : i32
    %c0_i32_1 = arith.constant 0 : i32
    %c0_i32_2 = arith.constant 0 : i32
    return %c0_i32, %c0_i32_0, %c0_i32_1 : i32, i32, i32
  }
  func.func @transform_2(%arg0: i32) -> (i32, i32) {
    %c0_i32 = arith.constant 0 : i32
    %c0_i32_0 = arith.constant 0 : i32
    return %c0_i32, %arg0 : i32, i32
  }
}

</mosaic_0001>

<bundles_post_ra>
// kernel: deepcrossing_forward.1
= control target key start
LH: loop header
LB: loop body
LE: loop exit
PB: predicated region body
PF: predicated region fallthrough
CT: control target
= control target key end

     0   :  { %s1712_s0 = inlined_call_operand.vmem [shape: bf16[128,128], index: 0, kind: input, shape index: {}]   ;;  %s1713_s1 = inlined_call_operand.vmem [shape: bf16[5,128,128], index: 1, kind: input, shape index: {}]   ;;  %s1714_s2 = inlined_call_operand.vmem [shape: f32[1,128], index: 2, kind: output, shape index: {}]  }
   0x1   :  { %v1408_v0 = vld [vmem:[%s1712_s0] sm:$0xff]   ;;  %v1413_v1 = vld [vmem:[%s1712_s0 + $0x8] sm:$0xff]   ;;  %v1418_v2 = vld [vmem:[%s1712_s0 + $0x10] sm:$0xff]  }
   0x2   :  { %1154 = vmatprep.subr.bf16.mxu0 %v1408_v0  ;;  %v1338_v3 = vld [vmem:[%s1713_s1] sm:$0xff]   ;;  %v1429_v4 = vld [vmem:[%s1712_s0 + $0x18] sm:$0xff]   ;;  %v1442_v6 = vld [vmem:[%s1712_s0 + $0x28] sm:$0xff]   ;;  %v28_v49 = vunpack.c.l.bf16 %v1408_v0  ;;  %v31_v50 = vunpack.c.h.bf16 %v1413_v1  ;;  %v30_v51 = vunpack.c.l.bf16 %v1413_v1  ;;  %v29_v53 = vunpack.c.h.bf16 %v1408_v0 }
   0x3   :  { %1155 = vmatpush3.bf16.msra.mxu0 %v1408_v0  ;;  %1170 = vmatprep.mubr.bf16.mxu0 %v1338_v3  ;;  %v1436_v5 = vld [vmem:[%s1712_s0 + $0x20] sm:$0xff]   ;;  %v1449_v7 = vld [vmem:[%s1712_s0 + $0x30] sm:$0xff]   ;;  %v1456_v8 = vld [vmem:[%s1712_s0 + $0x38] sm:$0xff]   ;;  %v35_v0 = vunpack.c.h.bf16 %v1429_v4 }
   0x4   :  { %1156 = vmatprep.subr.bf16.mxu0 %v1413_v1  ;;  %v1339_v9 = vld [vmem:[%s1713_s1 + $0x8] sm:$0xff]   ;;  %v1340_v10 = vld [vmem:[%s1713_s1 + $0x10] sm:$0xff]   ;;  %v1341_v11 = vld [vmem:[%s1713_s1 + $0x18] sm:$0xff]  }
   0x5   :  { %v1342_v12 = vld [vmem:[%s1713_s1 + $0x20] sm:$0xff]   ;;  %v1343_v13 = vld [vmem:[%s1713_s1 + $0x28] sm:$0xff]   ;;  %v1344_v14 = vld [vmem:[%s1713_s1 + $0x30] sm:$0xff]  }
   0x6   :  { %v1345_v15 = vld [vmem:[%s1713_s1 + $0x38] sm:$0xff]   ;;  %v1346_v16 = vld [vmem:[%s1713_s1 + $0x40] sm:$0xff]   ;;  %v1347_v41 = vld [vmem:[%s1713_s1 + $0x48] sm:$0xff]  }
   0x7   :  { %1157 = vmatpush3.bf16.msra.mxu0 %v1413_v1  ;;  %1202 = vmatprep.mubr.bf16.mxu1 %v1346_v16  ;;  %v1348_v42 = vld [vmem:[%s1713_s1 + $0x50] sm:$0xff]   ;;  %v1349_v43 = vld [vmem:[%s1713_s1 + $0x58] sm:$0xff]   ;;  %v1350_v44 = vld [vmem:[%s1713_s1 + $0x60] sm:$0xff]   ;;  %v32_v1 = vunpack.c.l.bf16 %v1418_v2 }
   0x8   :  { %1158 = vmatprep.subr.bf16.mxu0 %v1418_v2  ;;  %v1351_v45 = vld [vmem:[%s1713_s1 + $0x68] sm:$0xff]   ;;  %v1352_v46 = vld [vmem:[%s1713_s1 + $0x70] sm:$0xff]   ;;  %v1353_v47 = vld [vmem:[%s1713_s1 + $0x78] sm:$0xff]  }
   0x9   :  { %v1354_v48 = vld [vmem:[%s1713_s1 + $0x80] sm:$0xff]  }
   0xb   :  { %1159 = vmatpush3.bf16.msra.mxu0 %v1418_v2 }
   0xc   :  { %1160 = vmatprep.subr.bf16.mxu0 %v1429_v4 }
   0xf   :  { %1161 = vmatpush3.bf16.msra.mxu0 %v1429_v4 }
  0x10   :  { %1162 = vmatprep.subr.bf16.mxu0 %v1436_v5 }
  0x13   :  { %1163 = vmatpush3.bf16.msra.mxu0 %v1436_v5 }
  0x14   :  { %1164 = vmatprep.subr.bf16.mxu0 %v1442_v6 }
  0x17   :  { %1165 = vmatpush3.bf16.msra.mxu0 %v1442_v6 }
  0x18   :  { %1166 = vmatprep.subr.bf16.mxu0 %v1449_v7 }
  0x1b   :  { %1167 = vmatpush3.bf16.msra.mxu0 %v1449_v7 }
  0x1c   :  { %1168 = vmatprep.subr.bf16.mxu0 %v1456_v8 }
  0x1f   :  { %1169 = vmatpush3.bf16.msra.mxu0 %v1456_v8 }
  0x22   :  { %1171 = vmatmul.mubr.bf16.vlgmr.msra.gmra.mrb[0].mxu0 %v1339_v9 }
  0x23   :  { %1174 = vmatprep.mubr.bf16.mxu0 %v1340_v10  ;;  %v34_v10 = vunpack.c.l.bf16 %v1429_v4 }
  0x2a   :  { %1175 = vmatmul.mubr.bf16.gmra.mrb[4].mxu0 %v1341_v11 }
  0x2b   :  { %1178 = vmatprep.mubr.bf16.mxu0 %v1342_v12  ;;  %v33_v12 = vunpack.c.h.bf16 %v1418_v2 }
  0x32   :  { %1179 = vmatmul.mubr.bf16.gmra.mrb[8].mxu0 %v1343_v13 }
  0x33   :  { %1182 = vmatprep.mubr.bf16.mxu0 %v1344_v14 }
  0x3a   :  { %1183 = vmatmul.mubr.bf16.gmra.mrb[12].mxu0 %v1345_v15 }
  0x3b   :  { %1234 = vmatprep.mubr.bf16.mxu0 %v1354_v48 }
  0xf5   :  { %v1172_v17 = vpop.f32.mrb[0].mxu0 }
  0xf6   :  { %v190_v18 = vpop.f32.mrb[1].mxu0 }
  0xf7   :  { %v1173_v19 = vpop.f32.mrb[2].mxu0 }
  0xf8   :  { %v271_v20 = vpack.c.bf16 %v1173_v19, %v1172_v17  ;;  %v193_v21 = vpop.f32.mrb[3].mxu0 }
  0xf9   :  { %v270_v22 = vpack.c.bf16 %v193_v21, %v190_v18 }
  0xfb   :  { %1186 = vmatprep.subr.bf16.mxu1 %v270_v22 }
  0xfc   :  { %1187 = vmatpush3.bf16.msra.mxu1 %v270_v22  ;;  %v36_v22 = vunpack.c.l.bf16 %v1436_v5 }
  0xfd   :  { %v1176_v23 = vpop.f32.mrb[4].mxu0  ;;  %1188 = vmatprep.subr.bf16.mxu1 %v271_v20 }
  0xfe   :  { %v206_v24 = vpop.f32.mrb[5].mxu0 }
  0xff   :  { %v1177_v25 = vpop.f32.mrb[6].mxu0 }
 0x100   :  { %v273_v26 = vpack.c.bf16 %v1177_v25, %v1176_v23  ;;  %v209_v27 = vpop.f32.mrb[7].mxu0  ;;  %1189 = vmatpush3.bf16.msra.mxu1 %v271_v20  ;;  %v39_v23 = vunpack.c.h.bf16 %v1442_v6 }
 0x101   :  { %v272_v28 = vpack.c.bf16 %v209_v27, %v206_v24 }
 0x103   :  { %1190 = vmatprep.subr.bf16.mxu1 %v272_v28 }
 0x104   :  { %1191 = vmatpush3.bf16.msra.mxu1 %v272_v28  ;;  %v37_v28 = vunpack.c.h.bf16 %v1436_v5 }
 0x105   :  { %v1180_v29 = vpop.f32.mrb[8].mxu0  ;;  %1192 = vmatprep.subr.bf16.mxu1 %v273_v26 }
 0x106   :  { %v222_v30 = vpop.f32.mrb[9].mxu0 }
 0x107   :  { %v1181_v31 = vpop.f32.mrb[10].mxu0 }
 0x108   :  { %v275_v32 = vpack.c.bf16 %v1181_v31, %v1180_v29  ;;  %v225_v33 = vpop.f32.mrb[11].mxu0  ;;  %1193 = vmatpush3.bf16.msra.mxu1 %v273_v26  ;;  %v38_v26 = vunpack.c.l.bf16 %v1442_v6 }
 0x109   :  { %v274_v34 = vpack.c.bf16 %v225_v33, %v222_v30 }
 0x10b   :  { %1194 = vmatprep.subr.bf16.mxu1 %v274_v34 }
 0x10c   :  { %1195 = vmatpush3.bf16.msra.mxu1 %v274_v34 }
 0x10d   :  { %v1184_v35 = vpop.f32.mrb[12].mxu0  ;;  %1196 = vmatprep.subr.bf16.mxu1 %v275_v32 }
 0x10e   :  { %v238_v36 = vpop.f32.mrb[13].mxu0 }
 0x10f   :  { %v1185_v37 = vpop.f32.mrb[14].mxu0 }
 0x110   :  { %v277_v38 = vpack.c.bf16 %v1185_v37, %v1184_v35  ;;  %v241_v39 = vpop.f32.mrb[15].mxu0  ;;  %1197 = vmatpush3.bf16.msra.mxu1 %v275_v32 }
 0x111   :  { %v276_v40 = vpack.c.bf16 %v241_v39, %v238_v36  ;;  %v43_v39 = vunpack.c.h.bf16 %v1456_v8 }
 0x113   :  { %1198 = vmatprep.subr.bf16.mxu1 %v276_v40 }
 0x114   :  { %1199 = vmatpush3.bf16.msra.mxu1 %v276_v40 }
 0x115   :  { %1200 = vmatprep.subr.bf16.mxu1 %v277_v38 }
 0x118   :  { %1201 = vmatpush3.bf16.msra.mxu1 %v277_v38  ;;  %v40_v38 = vunpack.c.l.bf16 %v1449_v7 }
 0x11b   :  { %1203 = vmatmul.mubr.bf16.vlgmr.msra.gmra.mrb[0].mxu1 %v1347_v41 }
 0x11c   :  { %1206 = vmatprep.mubr.bf16.mxu1 %v1348_v42  ;;  %v42_v42 = vunpack.c.l.bf16 %v1456_v8 }
 0x123   :  { %1207 = vmatmul.mubr.bf16.gmra.mrb[4].mxu1 %v1349_v43 }
 0x124   :  { %1210 = vmatprep.mubr.bf16.mxu1 %v1350_v44  ;;  %v41_v44 = vunpack.c.h.bf16 %v1449_v7 }
 0x12b   :  { %1211 = vmatmul.mubr.bf16.gmra.mrb[8].mxu1 %v1351_v45 }
 0x12c   :  { %1214 = vmatprep.mubr.bf16.mxu1 %v1352_v46 }
 0x133   :  { %1215 = vmatmul.mubr.bf16.gmra.mrb[12].mxu1 %v1353_v47 }
 0x1ee   :  { %v1204_v52 = vpop.f32.mrb[0].mxu1 }
 0x1ef   :  { %v360_v54 = vpop.f32.mrb[1].mxu1  ;;  %v1520_v59 = vadd.f32 %v1204_v52, %v30_v51 }
 0x1f0   :  { %v1516_v55 = vadd.f32 %v360_v54, %v28_v49  ;;  %v1205_v56 = vpop.f32.mrb[2].mxu1 }
 0x1f1   :  { %v1518_v57 = vadd.f32 %v1205_v56, %v31_v50  ;;  %v363_v58 = vpop.f32.mrb[3].mxu1  ;;  %v425_v3 = vmax.f32 %v1520_v59, 0.0 }
 0x1f2   :  { %v1522_v60 = vadd.f32 %v363_v58, %v29_v53  ;;  %v423_v61 = vmax.f32 %v1516_v55, 0.0 }
 0x1f3   :  { %v426_v62 = vmax.f32 %v1518_v57, 0.0 }
 0x1f4   :  { %v424_v63 = vmax.f32 %v1522_v60, 0.0 }
 0x1f5   :  { %v457_v14 = vpack.c.bf16 %v426_v62, %v425_v3 }
 0x1f6   :  { %v456_v9 = vpack.c.bf16 %v424_v63, %v423_v61  ;;  %v1208_v11 = vpop.f32.mrb[4].mxu1 }
 0x1f7   :  { %v376_v13 = vpop.f32.mrb[5].mxu1  ;;  %v1544_v19 = vadd.f32 %v1208_v11, %v34_v10  ;;  %v1358_v10 = vld [vmem:[%s1713_s1 + $0xa0] sm:$0xff]   ;;  %v1359_v11 = vld [vmem:[%s1713_s1 + $0xa8] sm:$0xff]  }
 0x1f8   :  { %v1540_v15 = vadd.f32 %v376_v13, %v32_v1  ;;  %v1209_v16 = vpop.f32.mrb[6].mxu1  ;;  %1218 = vmatprep.subr.bf16.mxu0 %v456_v9  ;;  %v1355_v1 = vld [vmem:[%s1713_s1 + $0x88] sm:$0xff]   ;;  %v1361_v13 = vld [vmem:[%s1713_s1 + $0xb8] sm:$0xff]  }
 0x1f9   :  { %v1542_v17 = vadd.f32 %v1209_v16, %v35_v0  ;;  %v379_v18 = vpop.f32.mrb[7].mxu1  ;;  %1219 = vmatpush3.bf16.msra.mxu0 %v456_v9  ;;  %v429_v24 = vmax.f32 %v1544_v19, 0.0  ;;  %v1356_v0 = vld [vmem:[%s1713_s1 + $0x90] sm:$0xff]   ;;  %v1357_v9 = vld [vmem:[%s1713_s1 + $0x98] sm:$0xff]  }
 0x1fa   :  { %v1546_v4 = vadd.f32 %v379_v18, %v33_v12  ;;  %1220 = vmatprep.subr.bf16.mxu0 %v457_v14  ;;  %v427_v2 = vmax.f32 %v1540_v15, 0.0  ;;  %v1360_v12 = vld [vmem:[%s1713_s1 + $0xb0] sm:$0xff]  }
 0x1fb   :  { %v430_v20 = vmax.f32 %v1542_v17, 0.0 }
 0x1fc   :  { %v428_v21 = vmax.f32 %v1546_v4, 0.0 }
 0x1fd   :  { %1221 = vmatpush3.bf16.msra.mxu0 %v457_v14  ;;  %v459_v30 = vpack.c.bf16 %v430_v20, %v429_v24  ;;  %v1362_v14 = vld [vmem:[%s1713_s1 + $0xc0] sm:$0xff]  }
 0x1fe   :  { %v458_v25 = vpack.c.bf16 %v428_v21, %v427_v2  ;;  %v1212_v27 = vpop.f32.mrb[8].mxu1  ;;  %1266 = vmatprep.mubr.bf16.mxu1 %v1362_v14  ;;  %v1370_v14 = vld [vmem:[%s1713_s1 + $0x100] sm:$0xff]  }
 0x1ff   :  { %v392_v29 = vpop.f32.mrb[9].mxu1  ;;  %v1568_v35 = vadd.f32 %v1212_v27, %v38_v26 }
 0x200   :  { %v1564_v31 = vadd.f32 %v392_v29, %v36_v22  ;;  %v1213_v32 = vpop.f32.mrb[10].mxu1  ;;  %1222 = vmatprep.subr.bf16.mxu0 %v458_v25 }
 0x201   :  { %v1566_v33 = vadd.f32 %v1213_v32, %v39_v23  ;;  %v395_v34 = vpop.f32.mrb[11].mxu1  ;;  %1223 = vmatpush3.bf16.msra.mxu0 %v458_v25  ;;  %v433_v40 = vmax.f32 %v1568_v35, 0.0 }
 0x202   :  { %v1570_v6 = vadd.f32 %v395_v34, %v37_v28  ;;  %1224 = vmatprep.subr.bf16.mxu0 %v459_v30  ;;  %v431_v5 = vmax.f32 %v1564_v31, 0.0 }
 0x203   :  { %v434_v36 = vmax.f32 %v1566_v33, 0.0 }
 0x204   :  { %v432_v37 = vmax.f32 %v1570_v6, 0.0 }
 0x205   :  { %1225 = vmatpush3.bf16.msra.mxu0 %v459_v30  ;;  %v461_v46 = vpack.c.bf16 %v434_v36, %v433_v40 }
 0x206   :  { %v460_v41 = vpack.c.bf16 %v432_v37, %v431_v5  ;;  %v1216_v43 = vpop.f32.mrb[12].mxu1 }
 0x207   :  { %v408_v45 = vpop.f32.mrb[13].mxu1  ;;  %v1592_v51 = vadd.f32 %v1216_v43, %v42_v42 }
 0x208   :  { %v1588_v47 = vadd.f32 %v408_v45, %v40_v38  ;;  %v1217_v48 = vpop.f32.mrb[14].mxu1  ;;  %1226 = vmatprep.subr.bf16.mxu0 %v460_v41 }
 0x209   :  { %v1590_v49 = vadd.f32 %v1217_v48, %v43_v39  ;;  %v411_v50 = vpop.f32.mrb[15].mxu1  ;;  %1227 = vmatpush3.bf16.msra.mxu0 %v460_v41  ;;  %v437_v54 = vmax.f32 %v1592_v51, 0.0 }
 0x20a   :  { %v1594_v8 = vadd.f32 %v411_v50, %v41_v44  ;;  %1228 = vmatprep.subr.bf16.mxu0 %v461_v46  ;;  %v435_v7 = vmax.f32 %v1588_v47, 0.0 }
 0x20b   :  { %v438_v52 = vmax.f32 %v1590_v49, 0.0  ;;  %v1371_v49 = vld [vmem:[%s1713_s1 + $0x108] sm:$0xff]  }
 0x20c   :  { %v436_v53 = vmax.f32 %v1594_v8, 0.0  ;;  %v1373_v8 = vld [vmem:[%s1713_s1 + $0x128] sm:$0xff]  }
 0x20d   :  { %1229 = vmatpush3.bf16.msra.mxu0 %v461_v46  ;;  %v463_v58 = vpack.c.bf16 %v438_v52, %v437_v54 }
 0x20e   :  { %v462_v56 = vpack.c.bf16 %v436_v53, %v435_v7 }
 0x210   :  { %1230 = vmatprep.subr.bf16.mxu0 %v462_v56 }
 0x211   :  { %1231 = vmatpush3.bf16.msra.mxu0 %v462_v56 }
 0x212   :  { %1232 = vmatprep.subr.bf16.mxu0 %v463_v58 }
 0x215   :  { %1233 = vmatpush3.bf16.msra.mxu0 %v463_v58 }
 0x218   :  { %1235 = vmatmul.mubr.bf16.vlgmr.msra.gmra.mrb[16].mxu0 %v1355_v1  ;;  %v1363_v1 = vld [vmem:[%s1713_s1 + $0xc8] sm:$0xff]  }
 0x219   :  { %1238 = vmatprep.mubr.bf16.mxu0 %v1356_v0  ;;  %v1364_v0 = vld [vmem:[%s1713_s1 + $0xd0] sm:$0xff]  }
 0x220   :  { %1239 = vmatmul.mubr.bf16.gmra.mrb[20].mxu0 %v1357_v9  ;;  %v1365_v9 = vld [vmem:[%s1713_s1 + $0xd8] sm:$0xff]  }
 0x221   :  { %1242 = vmatprep.mubr.bf16.mxu0 %v1358_v10  ;;  %v1366_v10 = vld [vmem:[%s1713_s1 + $0xe0] sm:$0xff]  }
 0x228   :  { %1243 = vmatmul.mubr.bf16.gmra.mrb[24].mxu0 %v1359_v11  ;;  %v1367_v11 = vld [vmem:[%s1713_s1 + $0xe8] sm:$0xff]  }
 0x229   :  { %1246 = vmatprep.mubr.bf16.mxu0 %v1360_v12  ;;  %v1368_v12 = vld [vmem:[%s1713_s1 + $0xf0] sm:$0xff]  }
 0x230   :  { %1247 = vmatmul.mubr.bf16.gmra.mrb[28].mxu0 %v1361_v13  ;;  %v1369_v13 = vld [vmem:[%s1713_s1 + $0xf8] sm:$0xff]  }
 0x231   :  { %1298 = vmatprep.mubr.bf16.mxu0 %v1370_v14 }
 0x2eb   :  { %v1236_v16 = vpop.f32.mrb[16].mxu0 }
 0x2ec   :  { %v546_v18 = vpop.f32.mrb[17].mxu0 }
 0x2ed   :  { %v1237_v22 = vpop.f32.mrb[18].mxu0 }
 0x2ee   :  { %v627_v23 = vpack.c.bf16 %v1237_v22, %v1236_v16  ;;  %v549_v25 = vpop.f32.mrb[19].mxu0  ;;  %v1372_v16 = vld [vmem:[%s1713_s1 + $0x120] sm:$0xff]  }
 0x2ef   :  { %v626_v26 = vpack.c.bf16 %v549_v25, %v546_v18 }
 0x2f1   :  { %1250 = vmatprep.subr.bf16.mxu1 %v626_v26 }
 0x2f2   :  { %1251 = vmatpush3.bf16.msra.mxu1 %v626_v26 }
 0x2f3   :  { %v1240_v27 = vpop.f32.mrb[20].mxu0  ;;  %1252 = vmatprep.subr.bf16.mxu1 %v627_v23 }
 0x2f4   :  { %v562_v28 = vpop.f32.mrb[21].mxu0 }
 0x2f5   :  { %v1241_v29 = vpop.f32.mrb[22].mxu0 }
 0x2f6   :  { %v629_v30 = vpack.c.bf16 %v1241_v29, %v1240_v27  ;;  %v565_v32 = vpop.f32.mrb[23].mxu0  ;;  %1253 = vmatpush3.bf16.msra.mxu1 %v627_v23 }
 0x2f7   :  { %v628_v34 = vpack.c.bf16 %v565_v32, %v562_v28 }
 0x2f9   :  { %1254 = vmatprep.subr.bf16.mxu1 %v628_v34 }
 0x2fa   :  { %1255 = vmatpush3.bf16.msra.mxu1 %v628_v34 }
 0x2fb   :  { %v1244_v38 = vpop.f32.mrb[24].mxu0  ;;  %1256 = vmatprep.subr.bf16.mxu1 %v629_v30 }
 0x2fc   :  { %v578_v39 = vpop.f32.mrb[25].mxu0 }
 0x2fd   :  { %v1245_v41 = vpop.f32.mrb[26].mxu0 }
 0x2fe   :  { %v631_v42 = vpack.c.bf16 %v1245_v41, %v1244_v38  ;;  %v581_v43 = vpop.f32.mrb[27].mxu0  ;;  %1257 = vmatpush3.bf16.msra.mxu1 %v629_v30 }
 0x2ff   :  { %v630_v44 = vpack.c.bf16 %v581_v43, %v578_v39 }
 0x301   :  { %1258 = vmatprep.subr.bf16.mxu1 %v630_v44 }
 0x302   :  { %1259 = vmatpush3.bf16.msra.mxu1 %v630_v44 }
 0x303   :  { %v1248_v45 = vpop.f32.mrb[28].mxu0  ;;  %1260 = vmatprep.subr.bf16.mxu1 %v631_v42 }
 0x304   :  { %v594_v46 = vpop.f32.mrb[29].mxu0 }
 0x305   :  { %v1249_v48 = vpop.f32.mrb[30].mxu0 }
 0x306   :  { %v633_v50 = vpack.c.bf16 %v1249_v48, %v1248_v45  ;;  %v597_v56 = vpop.f32.mrb[31].mxu0  ;;  %1261 = vmatpush3.bf16.msra.mxu1 %v631_v42 }
 0x307   :  { %v632_v58 = vpack.c.bf16 %v597_v56, %v594_v46 }
 0x309   :  { %1262 = vmatprep.subr.bf16.mxu1 %v632_v58 }
 0x30a   :  { %1263 = vmatpush3.bf16.msra.mxu1 %v632_v58 }
 0x30b   :  { %1264 = vmatprep.subr.bf16.mxu1 %v633_v50 }
 0x30e   :  { %1265 = vmatpush3.bf16.msra.mxu1 %v633_v50 }
 0x311   :  { %1267 = vmatmul.mubr.bf16.vlgmr.msra.gmra.mrb[16].mxu1 %v1363_v1 }
 0x312   :  { %1270 = vmatprep.mubr.bf16.mxu1 %v1364_v0 }
 0x319   :  { %1271 = vmatmul.mubr.bf16.gmra.mrb[20].mxu1 %v1365_v9 }
 0x31a   :  { %1274 = vmatprep.mubr.bf16.mxu1 %v1366_v10 }
 0x321   :  { %1275 = vmatmul.mubr.bf16.gmra.mrb[24].mxu1 %v1367_v11 }
 0x322   :  { %1278 = vmatprep.mubr.bf16.mxu1 %v1368_v12  ;;  %v1376_v12 = vld [vmem:[%s1713_s1 + $0x118] sm:$0xff]  }
 0x329   :  { %1279 = vmatmul.mubr.bf16.gmra.mrb[28].mxu1 %v1369_v13  ;;  %v1377_v13 = vld [vmem:[%s1713_s1 + $0x138] sm:$0xff]  }
 0x32a   :  { %1306 = vmatprep.mubr.bf16.mxu1 %v1372_v16 }
 0x3e4   :  { %v1268_v18 = vpop.f32.mrb[16].mxu1 }
 0x3e5   :  { %v725_v22 = vadd.f32 %v1268_v18, %v425_v3  ;;  %v716_v23 = vpop.f32.mrb[17].mxu1 }
 0x3e6   :  { %v717_v25 = vadd.f32 %v716_v23, %v423_v61  ;;  %v1269_v26 = vpop.f32.mrb[18].mxu1 }
 0x3e7   :  { %v728_v27 = vadd.f32 %v1269_v26, %v426_v62  ;;  %v719_v28 = vpop.f32.mrb[19].mxu1  ;;  %v781_v30 = vmax.f32 %v725_v22, 0.0 }
 0x3e8   :  { %v720_v29 = vadd.f32 %v719_v28, %v424_v63  ;;  %v779_v34 = vmax.f32 %v717_v25, 0.0 }
 0x3e9   :  { %v782_v32 = vmax.f32 %v728_v27, 0.0 }
 0x3ea   :  { %v780_v38 = vmax.f32 %v720_v29, 0.0 }
 0x3eb   :  { %v813_v39 = vpack.c.bf16 %v782_v32, %v781_v30 }
 0x3ec   :  { %v812_v41 = vpack.c.bf16 %v780_v38, %v779_v34  ;;  %v1272_v59 = vpop.f32.mrb[20].mxu1 }
 0x3ed   :  { %v741_v3 = vadd.f32 %v1272_v59, %v429_v24  ;;  %v732_v55 = vpop.f32.mrb[21].mxu1 }
 0x3ee   :  { %v733_v61 = vadd.f32 %v732_v55, %v427_v2  ;;  %v1273_v57 = vpop.f32.mrb[22].mxu1  ;;  %1282 = vmatprep.subr.bf16.mxu0 %v812_v41  ;;  %1314 = vmatprep.subr.bf16.mxu1 %v812_v41 }
 0x3ef   :  { %v744_v60 = vadd.f32 %v1273_v57, %v430_v20  ;;  %v735_v62 = vpop.f32.mrb[23].mxu1  ;;  %1283 = vmatpush3.bf16.msra.mxu0 %v812_v41  ;;  %1322 = vmatpush3.bf16.msra.mxu1 %v812_v41  ;;  %v785_v19 = vmax.f32 %v741_v3, 0.0 }
 0x3f0   :  { %v736_v63 = vadd.f32 %v735_v62, %v428_v21  ;;  %1284 = vmatprep.subr.bf16.mxu0 %v813_v39  ;;  %1315 = vmatprep.subr.bf16.mxu1 %v813_v39  ;;  %v783_v42 = vmax.f32 %v733_v61, 0.0 }
 0x3f1   :  { %v786_v24 = vmax.f32 %v744_v60, 0.0 }
 0x3f2   :  { %v784_v43 = vmax.f32 %v736_v63, 0.0 }
 0x3f3   :  { %v815_v15 = vpack.c.bf16 %v786_v24, %v785_v19  ;;  %1285 = vmatpush3.bf16.msra.mxu0 %v813_v39  ;;  %1323 = vmatpush3.bf16.msra.mxu1 %v813_v39 }
 0x3f4   :  { %v814_v2 = vpack.c.bf16 %v784_v43, %v783_v42  ;;  %v1276_v44 = vpop.f32.mrb[24].mxu1 }
 0x3f5   :  { %v757_v17 = vadd.f32 %v1276_v44, %v433_v40  ;;  %v748_v20 = vpop.f32.mrb[25].mxu1 }
 0x3f6   :  { %v749_v45 = vadd.f32 %v748_v20, %v431_v5  ;;  %v1277_v4 = vpop.f32.mrb[26].mxu1  ;;  %1286 = vmatprep.subr.bf16.mxu0 %v814_v2  ;;  %1316 = vmatprep.subr.bf16.mxu1 %v814_v2 }
 0x3f7   :  { %v760_v21 = vadd.f32 %v1277_v4, %v434_v36  ;;  %v751_v46 = vpop.f32.mrb[27].mxu1  ;;  %1287 = vmatpush3.bf16.msra.mxu0 %v814_v2  ;;  %1324 = vmatpush3.bf16.msra.mxu1 %v814_v2  ;;  %v789_v35 = vmax.f32 %v757_v17, 0.0 }
 0x3f8   :  { %v752_v48 = vadd.f32 %v751_v46, %v432_v37  ;;  %1288 = vmatprep.subr.bf16.mxu0 %v815_v15  ;;  %1317 = vmatprep.subr.bf16.mxu1 %v815_v15  ;;  %v787_v50 = vmax.f32 %v749_v45, 0.0 }
 0x3f9   :  { %v790_v40 = vmax.f32 %v760_v21, 0.0 }
 0x3fa   :  { %v788_v56 = vmax.f32 %v752_v48, 0.0 }
 0x3fb   :  { %v817_v31 = vpack.c.bf16 %v790_v40, %v789_v35  ;;  %1289 = vmatpush3.bf16.msra.mxu0 %v815_v15  ;;  %1325 = vmatpush3.bf16.msra.mxu1 %v815_v15 }
 0x3fc   :  { %v816_v5 = vpack.c.bf16 %v788_v56, %v787_v50  ;;  %v1280_v58 = vpop.f32.mrb[28].mxu1 }
 0x3fd   :  { %v773_v33 = vadd.f32 %v1280_v58, %v437_v54  ;;  %v764_v36 = vpop.f32.mrb[29].mxu1 }
 0x3fe   :  { %v765_v1 = vadd.f32 %v764_v36, %v435_v7  ;;  %v1281_v6 = vpop.f32.mrb[30].mxu1  ;;  %1290 = vmatprep.subr.bf16.mxu0 %v816_v5  ;;  %1318 = vmatprep.subr.bf16.mxu1 %v816_v5 }
 0x3ff   :  { %v776_v37 = vadd.f32 %v1281_v6, %v438_v52  ;;  %v767_v0 = vpop.f32.mrb[31].mxu1  ;;  %1291 = vmatpush3.bf16.msra.mxu0 %v816_v5  ;;  %1326 = vmatpush3.bf16.msra.mxu1 %v816_v5  ;;  %v793_v51 = vmax.f32 %v773_v33, 0.0  ;;  %v1374_v52 = vld [vmem:[%s1713_s1 + $0x110] sm:$0xff]  }
 0x400   :  { %v768_v9 = vadd.f32 %v767_v0, %v436_v53  ;;  %1292 = vmatprep.subr.bf16.mxu0 %v817_v31  ;;  %1319 = vmatprep.subr.bf16.mxu1 %v817_v31  ;;  %v791_v10 = vmax.f32 %v765_v1, 0.0  ;;  %v1375_v53 = vld [vmem:[%s1713_s1 + $0x130] sm:$0xff]  }
 0x401   :  { %v794_v54 = vmax.f32 %v776_v37, 0.0 }
 0x402   :  { %v792_v11 = vmax.f32 %v768_v9, 0.0 }
 0x403   :  { %v819_v47 = vpack.c.bf16 %v794_v54, %v793_v51  ;;  %1293 = vmatpush3.bf16.msra.mxu0 %v817_v31  ;;  %1327 = vmatpush3.bf16.msra.mxu1 %v817_v31 }
 0x404   :  { %v818_v7 = vpack.c.bf16 %v792_v11, %v791_v10 }
 0x406   :  { %1294 = vmatprep.subr.bf16.mxu0 %v818_v7  ;;  %1320 = vmatprep.subr.bf16.mxu1 %v818_v7 }
 0x407   :  { %1295 = vmatpush3.bf16.msra.mxu0 %v818_v7  ;;  %1328 = vmatpush3.bf16.msra.mxu1 %v818_v7 }
 0x408   :  { %1296 = vmatprep.subr.bf16.mxu0 %v819_v47  ;;  %1321 = vmatprep.subr.bf16.mxu1 %v819_v47 }
 0x40b   :  { %1297 = vmatpush3.bf16.msra.mxu0 %v819_v47  ;;  %1329 = vmatpush3.bf16.msra.mxu1 %v819_v47 }
 0x40e   :  { %1299 = vmatmul.mubr.bf16.vlgmr.msra.gmra.mrb[32].mxu0 %v1371_v49  ;;  %1307 = vmatmul.mubr.bf16.vlgmr.msra.gmra.mrb[32].mxu1 %v1373_v8 }
 0x40f   :  { %1302 = vmatprep.mubr.bf16.mxu0 %v1374_v52  ;;  %1310 = vmatprep.mubr.bf16.mxu1 %v1375_v53 }
 0x416   :  { %1303 = vmatmul.mubr.bf16.gmra.mrb[36].mxu0 %v1376_v12  ;;  %1311 = vmatmul.mubr.bf16.gmra.mrb[36].mxu1 %v1377_v13 }
 0x4e1   :  { %v1300_v14 = vpop.f32.mrb[32].mxu0  ;;  %v1308_v16 = vpop.f32.mrb[32].mxu1 }
 0x4e2   :  { %v902_v18 = vpop.f32.mrb[33].mxu0  ;;  %v927_v22 = vpop.f32.mrb[33].mxu1 }
 0x4e3   :  { %v1073_v23 = vmul.f32 -1.442695, %v902_v18  ;;  %v1301_v25 = vpop.f32.mrb[34].mxu0  ;;  %v1309_v26 = vpop.f32.mrb[34].mxu1 }
 0x4e4   :  { %v905_v27 = vpop.f32.mrb[35].mxu0  ;;  %v929_v28 = vpop.f32.mrb[35].mxu1 }
 0x4e5   :  { %1386 = vpow2.f32 %v1073_v23 }
 0x4e9   :  { %v1304_v29 = vpop.f32.mrb[36].mxu0  ;;  %v1312_v30 = vpop.f32.mrb[36].mxu1 }
 0x4ea   :  { %v915_v32 = vpop.f32.mrb[37].mxu0  ;;  %v939_v34 = vpop.f32.mrb[37].mxu1 }
 0x4eb   :  { %v1305_v38 = vpop.f32.mrb[38].mxu0  ;;  %v1313_v39 = vpop.f32.mrb[38].mxu1 }
 0x4ec   :  { %v917_v41 = vpop.f32.mrb[39].mxu0  ;;  %v941_v59 = vpop.f32.mrb[39].mxu1 }
 0x4ef   :  { %v1387_v3 = vpop.eup %1386 }
 0x4f0   :  { %v953_v55 = vadd.f32 1.0, %v1387_v3 }
 0x4f2   :  { %1388 = vrcp.f32 %v953_v55 }
 0x4fc   :  { %v1389_v61 = vpop.eup %1388 }
 0x4fd   :  { %956 = vst [vmem:[%s1714_s2] sm:$0x1] %v1389_v61 }

</bundles_post_ra>
